<compile_context>
chip_gen: v7x
topology: tpu7x:2x2x1
jax: 0.10.0
libtpu: 0.0.40
codegen_flags: <defaults>
</compile_context>

<pallas_src>
import functools
import math

import jax
import jax.numpy as jnp
from jax.experimental import pallas as pl
from jax.experimental.pallas import tpu as pltpu

LOG_2PI = math.log(2.0 * math.pi)
HIDDEN = 64          # per-branch hidden width (fixed by the PyTorch module)
HF = 2 * HIDDEN      # fused (actor|critic) hidden width = 128 = one vreg lane width
OUT_ROWS = 8         # packed output rows: [mean_0..A-1, value, logp, pad...]


def actor_critic_kernel(state_ref, act_ref, w_ref, auxr_ref, auxc_ref, out_ref,
                        *, S, S_pad, A):
    """Fused actor+critic evaluate for one batch tile.

    state_ref : (TB, S)               f32  batch-tiled states
    act_ref   : (A, TB)               f32  actions, batch in lanes
    w_ref     : (S_pad + HF + 8, HF)  bf16 packed weights
                  rows [0:S]              fused layer-1  [aw1 | cw1]
                  rows [S_pad:S_pad+HF]   block-diag layer-2
                  rows [S_pad+HF:+8]      layer-3 transposed & row-packed
                                          (rows 0..A-1 actor, row A critic)
    auxr_ref  : (8, HF) f32  row 0 = fused bias-1, row 1 = fused bias-2
    auxc_ref  : (8, 8)  f32  col 0 = layer-3 bias column, col 1 = -1/(2*var),
                             [0,2] = sum of additive log-prob constants
    out_ref   : (8, TB) f32  rows 0..A-1 = tanh(mean), row A = value,
                             row A+1 = sum log_prob, rest 0
    """
    bf16 = jnp.bfloat16
    f32 = jnp.float32

    x = state_ref[...].astype(bf16)                        # (TB, S)
    w1 = w_ref[0:S, :]                                     # (S, HF)  bf16
    w2 = w_ref[S_pad:S_pad + HF, :]                        # (HF, HF) bf16
    w3 = w_ref[S_pad + HF:S_pad + HF + OUT_ROWS, :]        # (8, HF)  bf16
    b1 = auxr_ref[0:1, :]                                  # (1, HF)
    b2 = auxr_ref[1:2, :]                                  # (1, HF)
    b3 = auxc_ref[:, 0:1]                                  # (8, 1)
    coef = auxc_ref[0:A, 1:2]                              # (A, 1)  -1/(2*var)
    addc = auxc_ref[0:1, 2:3]                              # (1, 1)  -sum(log_std + .5*log2pi)

    # fused actor|critic MLP; bf16 operands, f32 MXU accumulation
    h = jnp.maximum(jnp.dot(x, w1, preferred_element_type=f32) + b1, 0.0)
    h = jnp.maximum(jnp.dot(h.astype(bf16), w2, preferred_element_type=f32) + b2, 0.0)

    # switch to batch-in-lanes layout for the tiny 8-row tail (one XLU transpose)
    ht = jnp.transpose(h).astype(bf16)                     # (HF, TB)
    y = jnp.dot(w3, ht, preferred_element_type=f32) + b3   # (8, TB)

    row = jax.lax.broadcasted_iota(jnp.int32, (OUT_ROWS, 1), 0)
    actor_mask = (row < A).astype(f32)                     # 1.0 on actor rows
    logp_mask = (row == A + 1).astype(f32)                 # 1.0 on the logp row

    # tanh only the actor rows; the critic value row passes through linearly
    sel = y + actor_mask * (jnp.tanh(y) - y)               # (8, TB)

    # Normal(mean, std) log_prob(action).sum(-1); constants pre-folded
    mean = sel[0:A, :]                                     # (A, TB)
    diff = act_ref[...] - mean
    logp = jnp.sum(coef * (diff * diff), axis=0, keepdims=True) + addc   # (1, TB)

    # rows A+1..7 of `sel` are exactly zero -> single lane-dense store
    out_ref[...] = sel + logp * logp_mask


def pack_params(p, state_dim, action_dim):
    """Pack the 13 raw parameters into one bf16 weight slab + two small f32 aux slabs."""
    S, A, H = state_dim, action_dim, HIDDEN
    assert A + 2 <= OUT_ROWS, "action_dim too large for the packed output rows"
    S_pad = ((S + 15) // 16) * 16        # keep layer-2/3 slices bf16-tile aligned

    # fused layer-1 weights, zero-row padded to S_pad rows
    w1f = jnp.zeros((S_pad, HF), jnp.float32)
    w1f = w1f.at[:S, :H].set(p["aw1"]).at[:S, H:].set(p["cw1"])
    # block-diagonal fused layer-2
    w2f = jnp.zeros((HF, HF), jnp.float32)
    w2f = w2f.at[:H, :H].set(p["aw2"]).at[H:, H:].set(p["cw2"])
    # layer-3, transposed & packed into 8 output rows (actor rows, then critic)
    w3t = jnp.zeros((OUT_ROWS, HF), jnp.float32)
    w3t = w3t.at[:A, :H].set(p["aw3"].T).at[A, H:].set(p["cw3"][:, 0])
    wslab = jnp.concatenate([w1f, w2f, w3t], axis=0).astype(jnp.bfloat16)

    # row-aux: fused biases for layers 1 and 2
    b1f = jnp.concatenate([p["ab1"], p["cb1"]], axis=1)     # (1, HF)
    b2f = jnp.concatenate([p["ab2"], p["cb2"]], axis=1)     # (1, HF)
    auxr = jnp.zeros((8, HF), jnp.float32).at[0].set(b1f[0]).at[1].set(b2f[0])

    # col-aux: layer-3 bias column, log-prob quadratic coef, folded additive const
    log_std = p["log_std"].astype(jnp.float32).reshape(A)
    var = jnp.exp(2.0 * log_std)
    auxc = jnp.zeros((8, 8), jnp.float32)
    auxc = auxc.at[:A, 0].set(p["ab3"].reshape(A)).at[A, 0].set(p["cb3"].reshape(()))
    auxc = auxc.at[:A, 1].set(-0.5 / var)
    auxc = auxc.at[0, 2].set(jnp.sum(-(log_std + 0.5 * LOG_2PI)))
    return wslab, auxr, auxc, S_pad


def _pick_batch_tile(B):
    # Large tiles amortize the ~0.35us per-grid-step overhead; even at 8192-row
    # tiles the live VMEM stays well under the 32 MiB scoped limit.
    if B <= 4096:
        return B
    # Prefer an even grid-step count so both v7x TensorCores stay busy.
    for t in (8192, 4096, 2048, 1024, 512, 256, 128):
        if B % t == 0 and (B // t) % 2 == 0:
            return t
    for t in (8192, 4096, 2048, 1024, 512, 256, 128):
        if B % t == 0:
            return t
    return B


def actor_critic_evaluate(state, action, params, *, batch_tile=None):
    """Returns (action_mean, action_logprobs, state_values, dist_entropy)."""
    B, S = state.shape
    A = action.shape[1]
    if batch_tile is None:
        batch_tile = _pick_batch_tile(B)
    assert B % batch_tile == 0

    wslab, auxr, auxc, S_pad = pack_params(params, S, A)
    state = state.astype(jnp.float32)
    act_t = action.astype(jnp.float32).T                     # (A, B), batch in lanes

    tile_rows = lambda i: (i, 0)      # batch tiled along sublanes (state)
    tile_cols = lambda i: (0, i)      # batch tiled along lanes (action, output)
    rep = lambda i: (0, 0)            # parameters replicated across the grid

    grid_spec = pltpu.PrefetchScalarGridSpec(
        num_scalar_prefetch=0,
        grid=(B // batch_tile,),
        in_specs=[
            pl.BlockSpec((batch_tile, S), tile_rows),
            pl.BlockSpec((A, batch_tile), tile_cols),
            pl.BlockSpec(wslab.shape, rep),
            pl.BlockSpec(auxr.shape, rep),
            pl.BlockSpec(auxc.shape, rep),
        ],
        out_specs=pl.BlockSpec((OUT_ROWS, batch_tile), tile_cols),
    )

    out = pl.pallas_call(
        functools.partial(actor_critic_kernel, S=S, S_pad=S_pad, A=A),
        out_shape=jax.ShapeDtypeStruct((OUT_ROWS, B), jnp.float32),
        grid_spec=grid_spec,
        compiler_params=pltpu.CompilerParams(
            dimension_semantics=("parallel",),
            vmem_limit_bytes=32 * 1024 * 1024),
    )(state, act_t, wslab, auxr, auxc)

    mean = out[:A, :].T                     # (B, A)
    value = out[A, :]                       # (B,)
    logp = out[A + 1, :]                    # (B,)
    # entropy depends only on log_std -> computed once outside the kernel
    log_std = params["log_std"].astype(jnp.float32)
    ent = jnp.broadcast_to(jnp.sum(0.5 + 0.5 * LOG_2PI + log_std), (B,))
    return mean, logp, value, ent


def init_params(key, state_dim, action_dim, hidden=HIDDEN, action_std_init=0.1):
    ks = jax.random.split(key, 12)

    def lin(kw, kb, fan_in, fan_out):
        # PyTorch nn.Linear default init: U(-1/sqrt(fan_in), 1/sqrt(fan_in))
        bound = 1.0 / math.sqrt(fan_in)
        w = jax.random.uniform(kw, (fan_in, fan_out), jnp.float32, -bound, bound)
        b = jax.random.uniform(kb, (1, fan_out), jnp.float32, -bound, bound)
        return w, b

    aw1, ab1 = lin(ks[0], ks[1], state_dim, hidden)
    aw2, ab2 = lin(ks[2], ks[3], hidden, hidden)
    aw3, ab3 = lin(ks[4], ks[5], hidden, action_dim)
    cw1, cb1 = lin(ks[6], ks[7], state_dim, hidden)
    cw2, cb2 = lin(ks[8], ks[9], hidden, hidden)
    cw3, cb3 = lin(ks[10], ks[11], hidden, 1)
    log_std = jnp.full((1, action_dim), math.log(action_std_init), jnp.float32)

    return dict(
        aw1=aw1, ab1=ab1, aw2=aw2, ab2=ab2, aw3=aw3, ab3=ab3,
        cw1=cw1, cb1=cb1, cw2=cw2, cb2=cb2, cw3=cw3, cb3=cb3,
        log_std=log_std,
    )


def reference_evaluate(state, action, p, matmul_dtype=jnp.float32):
    """Pure-JAX reference; matmul_dtype=bfloat16 mirrors the kernel's MXU precision."""
    def mm(x, w):
        return jnp.dot(x.astype(matmul_dtype), w.astype(matmul_dtype),
                       preferred_element_type=jnp.float32)

    def mlp(x, w1, b1, w2, b2, w3, b3):
        h = jnp.maximum(mm(x, w1) + b1, 0.0)
        h = jnp.maximum(mm(h, w2) + b2, 0.0)
        return mm(h, w3) + b3

    mean = jnp.tanh(mlp(state, p["aw1"], p["ab1"], p["aw2"], p["ab2"], p["aw3"], p["ab3"]))
    value = mlp(state, p["cw1"], p["cb1"], p["cw2"], p["cb2"], p["cw3"], p["cb3"])
    log_std = p["log_std"]
    std = jnp.exp(log_std)
    logp = jnp.sum(
        -((action - mean) ** 2) / (2.0 * std ** 2) - log_std - 0.5 * LOG_2PI, axis=-1
    )
    ent = jnp.sum(0.5 + 0.5 * LOG_2PI + jnp.broadcast_to(log_std, mean.shape), axis=-1)
    return mean, logp, value[:, 0], ent


def _check(state, action, params, **kw):
    mean, logp, value, ent = actor_critic_evaluate(state, action, params, **kw)
    jax.block_until_ready((mean, logp, value, ent))

    # tight check against a reference using the same bf16 matmul precision
    b_mean, b_logp, b_value, b_ent = reference_evaluate(state, action, params, jnp.bfloat16)
    assert jnp.allclose(mean, b_mean, atol=2e-3, rtol=1e-3), "mean mismatch (bf16 ref)"
    assert jnp.allclose(value, b_value, atol=2e-3, rtol=1e-3), "value mismatch (bf16 ref)"
    assert jnp.allclose(logp, b_logp, atol=5e-2, rtol=5e-3), "logp mismatch (bf16 ref)"
    assert jnp.allclose(ent, b_ent, atol=1e-5, rtol=1e-5), "entropy mismatch"

    # loose sanity check against the full-f32 reference (bf16 quantization noise)
    f_mean, f_logp, f_value, f_ent = reference_evaluate(state, action, params, jnp.float32)
    assert jnp.allclose(mean, f_mean, atol=5e-2), "mean mismatch (f32 ref)"
    assert jnp.allclose(value, f_value, atol=5e-2, rtol=1e-2), "value mismatch (f32 ref)"
    assert jnp.allclose(logp, f_logp, atol=1.0, rtol=1e-1), "logp mismatch (f32 ref)"
    assert jnp.allclose(ent, f_ent, atol=1e-5, rtol=1e-5), "entropy mismatch (f32 ref)"


if __name__ == "__main__":
    key = jax.random.PRNGKey(0)
    k_p, k_s, k_a, k_s2, k_a2 = jax.random.split(key, 5)

    state_dim, action_dim = 8, 4
    params = init_params(k_p, state_dim, action_dim)

    # small batch -> single whole-batch tile, grid=(1,)
    B1 = 16
    state = jax.random.normal(k_s, (B1, state_dim), jnp.float32)
    action = jax.random.normal(k_a, (B1, action_dim), jnp.float32)
    _check(state, action, params)

    # larger batch: default (single 256-row tile) and an explicit multi-step grid
    B2 = 256
    state2 = jax.random.normal(k_s2, (B2, state_dim), jnp.float32)
    action2 = jax.random.normal(k_a2, (B2, action_dim), jnp.float32)
    _check(state2, action2, params)                       # grid=(1,)
    _check(state2, action2, params, batch_tile=128)       # grid=(2,), "parallel"

    print("KERNEL_OK")
</pallas_src>

<mosaic_0001>
module attributes {stable_mosaic.version = 11 : i64} {
  func.func @actor_critic_kernel(%arg0: i32, %arg1: memref<16x8xf32, #tpu.memory_space<vmem>>, %arg2: memref<4x16xf32, #tpu.memory_space<vmem>>, %arg3: memref<152x128xbf16, #tpu.memory_space<vmem>>, %arg4: memref<8x128xf32, #tpu.memory_space<vmem>>, %arg5: memref<8x8xf32, #tpu.memory_space<vmem>>, %arg6: memref<8x16xf32, #tpu.memory_space<vmem>>) attributes {dimension_semantics = [#tpu.dimension_semantics<parallel>], iteration_bounds = array<i64: 1>, scalar_prefetch = 0 : i64, scratch_operands = 0 : i64, tpu.core_type = #tpu.core_type<tc>, window_params = [{transform_indices = @transform_0, window_bounds = array<i64: 16, 8>}, {transform_indices = @transform_1, window_bounds = array<i64: 4, 16>}, {pipeline_mode = #tpu.pipeline_mode<synchronous>, transform_indices = @transform_2, window_bounds = array<i64: 152, 128>}, {pipeline_mode = #tpu.pipeline_mode<synchronous>, transform_indices = @transform_3, window_bounds = array<i64: 8, 128>}, {pipeline_mode = #tpu.pipeline_mode<synchronous>, transform_indices = @transform_4, window_bounds = array<i64: 8, 8>}, {transform_indices = @transform_5, window_bounds = array<i64: 8, 16>}]} {
    %c0 = arith.constant 0 : index
    %c0_0 = arith.constant 0 : index
    %0 = vector.load %arg1[%c0, %c0_0] : memref<16x8xf32, #tpu.memory_space<vmem>>, vector<16x8xf32>
    %1 = arith.truncf %0 : vector<16x8xf32> to vector<16x8xbf16>
    %c0_1 = arith.constant 0 : index
    %c0_2 = arith.constant 0 : index
    %2 = vector.load %arg3[%c0_1, %c0_2] : memref<152x128xbf16, #tpu.memory_space<vmem>>, vector<8x128xbf16>
    %c16 = arith.constant 16 : index
    %c0_3 = arith.constant 0 : index
    %3 = vector.load %arg3[%c16, %c0_3] : memref<152x128xbf16, #tpu.memory_space<vmem>>, vector<128x128xbf16>
    %c144 = arith.constant 144 : index
    %c0_4 = arith.constant 0 : index
    %4 = vector.load %arg3[%c144, %c0_4] : memref<152x128xbf16, #tpu.memory_space<vmem>>, vector<8x128xbf16>
    %c0_5 = arith.constant 0 : index
    %c0_6 = arith.constant 0 : index
    %5 = vector.load %arg4[%c0_5, %c0_6] : memref<8x128xf32, #tpu.memory_space<vmem>>, vector<1x128xf32>
    %c1 = arith.constant 1 : index
    %c0_7 = arith.constant 0 : index
    %6 = vector.load %arg4[%c1, %c0_7] : memref<8x128xf32, #tpu.memory_space<vmem>>, vector<1x128xf32>
    %c0_8 = arith.constant 0 : index
    %c0_9 = arith.constant 0 : index
    %7 = vector.load %arg5[%c0_8, %c0_9] : memref<8x8xf32, #tpu.memory_space<vmem>>, vector<8x1xf32>
    %c0_10 = arith.constant 0 : index
    %c1_11 = arith.constant 1 : index
    %8 = vector.load %arg5[%c0_10, %c1_11] : memref<8x8xf32, #tpu.memory_space<vmem>>, vector<4x1xf32>
    %c0_12 = arith.constant 0 : index
    %c2 = arith.constant 2 : index
    %9 = vector.load %arg5[%c0_12, %c2] : memref<8x8xf32, #tpu.memory_space<vmem>>, vector<1x1xf32>
    %cst = arith.constant dense<0.000000e+00> : vector<16x128xf32>
    %10 = tpu.matmul %1, %2, %cst {dimension_numbers = #tpu.dot_dimension_numbers<[1], [0], [0], [1], [0, 0, 1, 1], [], []>} : vector<16x8xbf16>, vector<8x128xbf16>, vector<16x128xf32> -> vector<16x128xf32>
    %11 = vector.broadcast %5 : vector<1x128xf32> to vector<16x128xf32>
    %12 = arith.addf %10, %11 : vector<16x128xf32>
    %cst_13 = arith.constant 0.000000e+00 : f32
    %13 = vector.broadcast %cst_13 : f32 to vector<16x128xf32>
    %14 = arith.maximumf %12, %13 : vector<16x128xf32>
    %15 = arith.truncf %14 : vector<16x128xf32> to vector<16x128xbf16>
    %cst_14 = arith.constant dense<0.000000e+00> : vector<16x128xf32>
    %16 = tpu.matmul %15, %3, %cst_14 {dimension_numbers = #tpu.dot_dimension_numbers<[1], [0], [0], [1], [0, 0, 1, 1], [], []>} : vector<16x128xbf16>, vector<128x128xbf16>, vector<16x128xf32> -> vector<16x128xf32>
    %17 = vector.broadcast %6 : vector<1x128xf32> to vector<16x128xf32>
    %18 = arith.addf %16, %17 : vector<16x128xf32>
    %cst_15 = arith.constant 0.000000e+00 : f32
    %19 = vector.broadcast %cst_15 : f32 to vector<16x128xf32>
    %20 = arith.maximumf %18, %19 : vector<16x128xf32>
    %21 = tpu.transpose %20, [1, 0] : vector<16x128xf32> -> vector<128x16xf32>
    %22 = arith.truncf %21 : vector<128x16xf32> to vector<128x16xbf16>
    %cst_16 = arith.constant dense<0.000000e+00> : vector<8x16xf32>
    %23 = tpu.matmul %4, %22, %cst_16 {dimension_numbers = #tpu.dot_dimension_numbers<[1], [0], [0], [1], [0, 0, 1, 1], [], []>} : vector<8x128xbf16>, vector<128x16xbf16>, vector<8x16xf32> -> vector<8x16xf32>
    %24 = vector.broadcast %7 : vector<8x1xf32> to vector<8x16xf32>
    %25 = arith.addf %23, %24 : vector<8x16xf32>
    %26 = tpu.iota {dimensions = array<i32: 0>} : vector<8x1xi32>
    %c4_i32 = arith.constant 4 : i32
    %27 = vector.broadcast %c4_i32 : i32 to vector<8x1xi32>
    %28 = arith.cmpi slt, %26, %27 : vector<8x1xi32>
    %29 = arith.extui %28 : vector<8x1xi1> to vector<8x1xi32>
    %30 = arith.sitofp %29 : vector<8x1xi32> to vector<8x1xf32>
    %c5_i32 = arith.constant 5 : i32
    %31 = vector.broadcast %c5_i32 : i32 to vector<8x1xi32>
    %32 = arith.cmpi eq, %26, %31 : vector<8x1xi32>
    %33 = arith.extui %32 : vector<8x1xi1> to vector<8x1xi32>
    %34 = arith.sitofp %33 : vector<8x1xi32> to vector<8x1xf32>
    %35 = math.tanh %25 : vector<8x16xf32>
    %36 = arith.subf %35, %25 : vector<8x16xf32>
    %37 = vector.broadcast %30 : vector<8x1xf32> to vector<8x16xf32>
    %38 = arith.mulf %37, %36 : vector<8x16xf32>
    %39 = arith.addf %25, %38 : vector<8x16xf32>
    %40 = vector.extract_strided_slice %39 {offsets = [0, 0], sizes = [4, 16], strides = [1, 1]} : vector<8x16xf32> to vector<4x16xf32>
    %c0_17 = arith.constant 0 : index
    %c0_18 = arith.constant 0 : index
    %41 = vector.load %arg2[%c0_17, %c0_18] : memref<4x16xf32, #tpu.memory_space<vmem>>, vector<4x16xf32>
    %42 = arith.subf %41, %40 : vector<4x16xf32>
    %43 = arith.mulf %42, %42 : vector<4x16xf32>
    %44 = vector.broadcast %8 : vector<4x1xf32> to vector<4x16xf32>
    %45 = arith.mulf %44, %43 : vector<4x16xf32>
    %cst_19 = arith.constant dense<0.000000e+00> : vector<16xf32>
    %46 = vector.multi_reduction <add>, %45, %cst_19 [0] : vector<4x16xf32> to vector<16xf32>
    %47 = vector.shape_cast %46 : vector<16xf32> to vector<1x16xf32>
    %48 = vector.broadcast %9 : vector<1x1xf32> to vector<1x16xf32>
    %49 = arith.addf %47, %48 : vector<1x16xf32>
    %50 = vector.broadcast %49 : vector<1x16xf32> to vector<8x16xf32>
    %51 = vector.broadcast %34 : vector<8x1xf32> to vector<8x16xf32>
    %52 = arith.mulf %50, %51 : vector<8x16xf32>
    %53 = arith.addf %39, %52 : vector<8x16xf32>
    %c0_20 = arith.constant 0 : index
    %c0_21 = arith.constant 0 : index
    %54 = vector.load %arg6[%c0_20, %c0_21] : memref<8x16xf32, #tpu.memory_space<vmem>>, vector<8x16xf32>
    tpu.vector_store %arg6[%c0_20, %c0_21], %53 {strides = array<i32>} : memref<8x16xf32, #tpu.memory_space<vmem>>, vector<8x16xf32>,
    return
  }
  func.func @transform_0(%arg0: i32) -> (i32, i32) {
    %c0_i32 = arith.constant 0 : i32
    %c0_i32_0 = arith.constant 0 : i32
    return %arg0, %c0_i32 : i32, i32
  }
  func.func @transform_1(%arg0: i32) -> (i32, i32) {
    %c0_i32 = arith.constant 0 : i32
    %c0_i32_0 = arith.constant 0 : i32
    return %c0_i32, %arg0 : i32, i32
  }
  func.func @transform_2(%arg0: i32) -> (i32, i32) {
    %c0_i32 = arith.constant 0 : i32
    %c0_i32_0 = arith.constant 0 : i32
    %c0_i32_1 = arith.constant 0 : i32
    return %c0_i32, %c0_i32_0 : i32, i32
  }
  func.func @transform_3(%arg0: i32) -> (i32, i32) {
    %c0_i32 = arith.constant 0 : i32
    %c0_i32_0 = arith.constant 0 : i32
    %c0_i32_1 = arith.constant 0 : i32
    return %c0_i32, %c0_i32_0 : i32, i32
  }
  func.func @transform_4(%arg0: i32) -> (i32, i32) {
    %c0_i32 = arith.constant 0 : i32
    %c0_i32_0 = arith.constant 0 : i32
    %c0_i32_1 = arith.constant 0 : i32
    return %c0_i32, %c0_i32_0 : i32, i32
  }
  func.func @transform_5(%arg0: i32) -> (i32, i32) {
    %c0_i32 = arith.constant 0 : i32
    %c0_i32_0 = arith.constant 0 : i32
    return %c0_i32, %arg0 : i32, i32
  }
}

</mosaic_0001>

<bundles_post_ra>
// kernel: tpu_custom_call.1
= control target key start
LH: loop header
LB: loop body
LE: loop exit
PB: predicated region body
PF: predicated region fallthrough
CT: control target
= control target key end

     0   :  { %10 = vsyncpa [#allocation3], 0  ;;  %s617_s0 = inlined_call_operand.vmem [shape: f32[16,8], index: 0, kind: input, shape index: {}]   ;;  %s618_s1 = inlined_call_operand.vmem [shape: f32[4,16], index: 1, kind: input, shape index: {}]   ;;  %s619_s2 = inlined_call_operand.hbm [shape: bf16[152,128], index: 2, kind: input, shape index: {}]   ;;  %s620_s3 = inlined_call_operand.vmem [shape: f32[8,128], index: 3, kind: input, shape index: {}]   ;;  %s621_s4 = inlined_call_operand.vmem [shape: f32[8,8], index: 4, kind: input, shape index: {}]   ;;  %s622_s5 = inlined_call_operand.hbm [shape: f32[8,16], index: 5, kind: output, shape index: {}]  }
   0x1   :  { %11 = vsyncpa [#allocation4], 0  ;;  %s505_s18 = smov [#allocation2]   ;;  %s457_s22 = scalar_lea.hbm %s619_s2, 1216 }
   0x2   :  { %s21_s19 = sshll.u32 %s505_s18, 4  ;;  %p458_p0 = scmp.ne.s32.totalorder %s619_s2, %s457_s22  ;;  %s22_s19 = int_to_ptr.vmem [resolvable:$true] %s21_s19 }
   0x3   :  { %p461_p1 = scmp.lt.u32.totalorder %s457_s22, %s619_s2 }
   0x5   :  { %p463_p2 = pnand %p461_p1, %p458_p0 }
   0x7   :  { %466 = shalt.err (!%p463_p2)
}
   0x8   :  { %s467_s27 = scalar_lea.vmem %s22_s19, 1216  ;;  %p472_p4 = scmp.lt.s32.totalorder %s22_s19, %s22_s19 }
   0x9   :  { %p468_p3 = scmp.ne.s32.totalorder %s22_s19, %s467_s27  ;;  %p473_p5 = scmp.lt.s32.totalorder %s467_s27, %s467_s27 }
   0xb   :  { %p474_p6 = por %p473_p5, %p472_p4 }
   0xd   :  { %p475_p7 = pnand %p474_p6, %p468_p3 }
   0xf   :  { %478 = shalt.err (!%p475_p7)
}
  0x10   :  { %s506_s28 = smov 64   ;;  %s507_s29 = smov 4  }
  0x11   :  { %27 = dma.hbm_to_vmem [thread:$0]  %s619_s2, 1216, %s22_s19, [#allocation3], %s506_s28, %s506_s28, %s507_s29  }
  0x12   :  { %501 = dma.done.wait [#allocation3], 1216  }
  0x13   :  { %502 = vsyncadd [#allocation3], 4294966080  ;;  %v508_v0 = vmov 0.0   ;;  %vm509_vm0 = vmmov 0   ;;  %vm70_vm1 = vcmask 1043456   ;;  %v36_v2 = vld [vmem:[%s617_s0] sm:$0xff] }
  0x14   :  { %389 = vmatprep.subr.bf16.mxu0 %v508_v0  ;;  %391 = vmatprep.mubr.msk.bf16.mxu0 %vm509_vm0, %v508_v0  ;;  %v39_v1 = vld [vmem:[#allocation2] sm:$0xf]  ;;  %v37_v3 = vld [vmem:[%s617_s0 + $0x8] sm:$0xff]  ;;  %vm66_vm2 = vcmask 64512   ;;  %v448_v7 = vld [vmem:[#allocation2 + $0x10] sm:$0xff]   ;;  %v510_v34 = vmov 0  }
  0x15   :  { %395 = vmatprep.subr.bf16.mxu1 %v508_v0  ;;  %411 = vmatprep.mubr.msk.bf16.mxu1 %vm509_vm0, %v508_v0  ;;  %v72_v4 = vsel %vm70_vm1, %v39_v1, 0  ;;  %v38_v5 = vpack.c.bf16 %v37_v3, %v36_v2  ;;  %v447_v6 = vld [vmem:[#allocation2 + $0x8] sm:$0xff]   ;;  %v449_v8 = vld [vmem:[#allocation2 + $0x18] sm:$0xff]   ;;  %v450_v9 = vld [vmem:[#allocation2 + $0x20] sm:$0xff]   ;;  %v511_v35 = vmov 2   ;;  %v512_v37 = vmov 1  }
  0x16   :  { %390 = vmatpush3.bf16.msra.mxu0 %v72_v4  ;;  %396 = vmatpush3.bf16.msra.mxu1 %v447_v6  ;;  %v451_v10 = vld [vmem:[#allocation2 + $0x28] sm:$0xff]   ;;  %v452_v11 = vld [vmem:[#allocation2 + $0x30] sm:$0xff]   ;;  %v453_v12 = vld [vmem:[#allocation2 + $0x38] sm:$0xff]   ;;  %v298_v6 = vlaneseq  ;;  %vm319_vm4 = vcmask 125952   ;;  %vm339_vm6 = vcmask 130048  }
  0x17   :  { %415 = vmatprep.subr.bf16.mxu0 %v508_v0  ;;  %397 = vmatprep.subr.bf16.mxu1 %v508_v0  ;;  %v454_v13 = vld [vmem:[#allocation2 + $0x40] sm:$0xff]   ;;  %v56_v63 = vld [vmem:[#allocation2 + $0x48] sm:$0xf] }
  0x18   :  { %v356_v14 = vld [vmem:[%s620_s3] ss:$0 sm:$0xff]  ;;  %v358_v24 = vld [vmem:[%s620_s3 + $0x1] ss:$0 sm:$0xff]  ;;  %444 = vset.pattern.permute.xlu1 %v510_v34 }
  0x19   :  { %392 = vmatmul.mubr.msk.bf16.vlgmr.msra.gmra.mrb[0].mxu0 %vm66_vm2, %v38_v5  ;;  %v59_v33 = vld [vmem:[%s621_s4] sm:$0xff] }
  0x1a   :  { %431 = vmatprep.mubr.msk.bf16.mxu0 %vm509_vm0, %v508_v0  ;;  %398 = vmatpush3.bf16.msra.mxu1 %v448_v7  ;;  %v60_v36 = vld [vmem:[%s621_s4] sm:$0xf] }
  0x1b   :  { %399 = vmatprep.subr.bf16.mxu1 %v508_v0  ;;  %255 = vperm.xlu1 %444, %v59_v33   ;;  %v61_v38 = vld [vmem:[%s621_s4] sm:$0x1] }
  0x1e   :  { %400 = vmatpush3.bf16.msra.mxu1 %v449_v8  ;;  %v299_v8 = vshrl.u32 %v298_v6, 7 }
  0x1f   :  { %401 = vmatprep.subr.bf16.mxu1 %v508_v0  ;;  %445 = vset.pattern.permute.xlu1 %v512_v37 }
  0x20   :  { %315 = vperm.xlu1 %445, %v60_v36   ;;  %vm300_vm3 = vcmp.lt.s32.totalorder %v299_v8, 4  ;;  %vm303_vm5 = vcmp.eq.s32.totalorder %v299_v8, 5 }
  0x22   :  { %402 = vmatpush3.bf16.msra.mxu1 %v450_v9 }
  0x23   :  { %403 = vmatprep.subr.bf16.mxu1 %v508_v0 }
  0x26   :  { %404 = vmatpush3.bf16.msra.mxu1 %v451_v10  ;;  %v367_v10 = vsel %vm300_vm3, 1.0, %v508_v0 }
  0x27   :  { %405 = vmatprep.subr.bf16.mxu1 %v508_v0 }
  0x2a   :  { %406 = vmatpush3.bf16.msra.mxu1 %v452_v11 }
  0x2b   :  { %407 = vmatprep.subr.bf16.mxu1 %v508_v0 }
  0x2e   :  { %408 = vmatpush3.bf16.msra.mxu1 %v453_v12 }
  0x2f   :  { %409 = vmatprep.subr.bf16.mxu1 %v508_v0 }
  0x32   :  { %410 = vmatpush3.bf16.msra.mxu1 %v454_v13  ;;  %v310_v13 = vld [vmem:[%s618_s1] sm:$0xf]  ;;  %s513_s1 = smov [#allocation5]  }
  0x33   :  { %s347_s19 = sshll.u32 %s513_s1, 4  ;;  %s348_s19 = int_to_ptr.vmem [resolvable:$true] %s347_s19 }
  0x34   :  { %s479_s20 = scalar_lea.vmem %s348_s19, 128  ;;  %p484_p9 = scmp.lt.s32.totalorder %s348_s19, %s348_s19 }
  0x35   :  { %p480_p8 = scmp.ne.s32.totalorder %s348_s19, %s479_s20  ;;  %p485_p10 = scmp.lt.s32.totalorder %s479_s20, %s479_s20 }
  0x37   :  { %p486_p11 = por %p485_p10, %p484_p9 }
  0x39   :  { %p487_p12 = pnand %p486_p11, %p480_p8 }
  0x9a   :  { %v256_v1 = vpop.permute.xlu1 %255 }
  0xec   :  { %v108_v15 = vpop.f32.mrb[0].mxu0 }
  0xed   :  { %v109_v16 = vadd.f32 %v356_v14, %v108_v15  ;;  %v393_v17 = vpop.f32.mrb[1].mxu0 }
  0xee   :  { %v111_v18 = vpop.f32.mrb[2].mxu0 }
  0xef   :  { %v112_v19 = vadd.f32 %v356_v14, %v111_v18  ;;  %v394_v20 = vpop.f32.mrb[3].mxu0  ;;  %v115_v21 = vmax.f32 %v109_v16, 0.0  ;;  %v316_v16 = vpop.permute.xlu1 %315 }
  0xf1   :  { %v116_v22 = vmax.f32 %v112_v19, 0.0 }
  0xf3   :  { %v117_v23 = vpack.c.bf16 %v116_v22, %v115_v21 }
  0xf5   :  { %412 = vmatmul.mubr.bf16.vlgmr.msra.gmra.mrb[0].mxu1 %v117_v23 }
 0x1c8   :  { %v204_v25 = vpop.f32.mrb[0].mxu1 }
 0x1c9   :  { %v413_v26 = vpop.f32.mrb[1].mxu1  ;;  %v205_v27 = vadd.f32 %v358_v24, %v204_v25 }
 0x1ca   :  { %v207_v28 = vpop.f32.mrb[2].mxu1  ;;  %v335_v26 = vsub.s32 0, %v299_v8 }
 0x1cb   :  { %v208_v29 = vadd.f32 %v358_v24, %v207_v28  ;;  %v414_v30 = vpop.f32.mrb[3].mxu1  ;;  %v211_v31 = vmax.f32 %v205_v27, 0.0 }
 0x1cd   :  { %213 = vxpose.xlu0.b32.start [1/2] (short) %v211_v31, 128  ;;  %v212_v32 = vmax.f32 %v208_v29, 0.0  ;;  %v368_v29 = vsel %vm303_vm5, 1.0, %v508_v0 }
 0x1d1   :  { %214 = vxpose.xlu0.b32.end [2/2] (short) %v212_v32, 128 }
 0x1fa   :  { %446 = vset.pattern.permute.xlu0 %v511_v35 }
 0x232   :  { %329 = vperm.xlu0 %446, %v61_v38  }
 0x24d   :  { %v229_v39 = vpop.trf.xlu0 }
 0x251   :  { %v230_v40 = vpop.trf.xlu0 }
 0x252   :  { %v245_v41 = vpack.c.bf16 %v230_v40, %v229_v39 }
 0x254   :  { %416 = vmatpush3.bf16.msra.mxu0 %v245_v41 }
 0x255   :  { %v231_v42 = vpop.trf.xlu0  ;;  %417 = vmatprep.subr.bf16.mxu0 %v508_v0 }
 0x259   :  { %v232_v43 = vpop.trf.xlu0 }
 0x25a   :  { %v246_v44 = vpack.c.bf16 %v232_v43, %v231_v42 }
 0x25c   :  { %418 = vmatpush3.bf16.msra.mxu0 %v246_v44 }
 0x25d   :  { %v233_v45 = vpop.trf.xlu0  ;;  %419 = vmatprep.subr.bf16.mxu0 %v508_v0 }
 0x261   :  { %v234_v46 = vpop.trf.xlu0 }
 0x262   :  { %v247_v47 = vpack.c.bf16 %v234_v46, %v233_v45 }
 0x264   :  { %420 = vmatpush3.bf16.msra.mxu0 %v247_v47 }
 0x265   :  { %v235_v48 = vpop.trf.xlu0  ;;  %421 = vmatprep.subr.bf16.mxu0 %v508_v0 }
 0x269   :  { %v236_v49 = vpop.trf.xlu0 }
 0x26a   :  { %v248_v50 = vpack.c.bf16 %v236_v49, %v235_v48 }
 0x26c   :  { %422 = vmatpush3.bf16.msra.mxu0 %v248_v50 }
 0x26d   :  { %v237_v51 = vpop.trf.xlu0  ;;  %423 = vmatprep.subr.bf16.mxu0 %v508_v0 }
 0x271   :  { %v238_v52 = vpop.trf.xlu0 }
 0x272   :  { %v249_v53 = vpack.c.bf16 %v238_v52, %v237_v51 }
 0x274   :  { %424 = vmatpush3.bf16.msra.mxu0 %v249_v53 }
 0x275   :  { %v239_v54 = vpop.trf.xlu0  ;;  %425 = vmatprep.subr.bf16.mxu0 %v508_v0 }
 0x279   :  { %v240_v55 = vpop.trf.xlu0 }
 0x27a   :  { %v250_v56 = vpack.c.bf16 %v240_v55, %v239_v54 }
 0x27c   :  { %426 = vmatpush3.bf16.msra.mxu0 %v250_v56 }
 0x27d   :  { %v241_v57 = vpop.trf.xlu0  ;;  %427 = vmatprep.subr.bf16.mxu0 %v508_v0 }
 0x281   :  { %v242_v58 = vpop.trf.xlu0 }
 0x282   :  { %v251_v59 = vpack.c.bf16 %v242_v58, %v241_v57 }
 0x284   :  { %428 = vmatpush3.bf16.msra.mxu0 %v251_v59 }
 0x285   :  { %v243_v60 = vpop.trf.xlu0  ;;  %429 = vmatprep.subr.bf16.mxu0 %v508_v0 }
 0x289   :  { %v244_v61 = vpop.trf.xlu0 }
 0x28a   :  { %v252_v62 = vpack.c.bf16 %v244_v61, %v243_v60 }
 0x28c   :  { %430 = vmatpush3.bf16.msra.mxu0 %v252_v62 }
 0x28f   :  { %432 = vmatmul.mubr.bf16.vlgmr.msra.gmra.mrb[4].mxu0 %v56_v63 }
 0x2b1   :  { %v330_v25 = vpop.permute.xlu0 %329 }
 0x362   :  { %v292_v2 = vpop.f32.mrb[4].mxu0 }
 0x363   :  { %v293_v3 = vadd.f32 %v292_v2, %v256_v1  ;;  %v433_v4 = vpop.f32.mrb[5].mxu0 }
 0x364   :  { %v295_v5 = vpop.f32.mrb[6].mxu0 }
 0x365   :  { %455 = vtanh.f32 %v293_v3  ;;  %v434_v7 = vpop.f32.mrb[7].mxu0 }
 0x36f   :  { %v456_v9 = vpop.eup %455 }
 0x370   :  { %v307_v11 = vsub.f32 %v456_v9, %v293_v3 }
 0x372   :  { %v308_v12 = vmul.f32 %v367_v10, %v307_v11 }
 0x374   :  { %v309_v14 = vadd.f32 %v308_v12, %v293_v3 }
 0x376   :  { %v311_v15 = vsub.f32 %v310_v13, %v309_v14 }
 0x378   :  { %v312_v17 = vmul.f32 %v311_v15, %v311_v15 }
 0x37a   :  { %v318_v18 = vmul.f32 %v316_v16, %v312_v17 }
 0x37c   :  { %v320_v19 = vsel %vm319_vm4, %v318_v18, 0.0 }
 0x37d   :  { %v321_v20 = vrot.slane %v320_v19, 4 }
 0x37f   :  { %v322_v21 = vadd.f32 %v321_v20, %v320_v19 }
 0x381   :  { %v323_v22 = vrot.slane %v322_v21, 2 }
 0x383   :  { %v324_v23 = vadd.f32 %v323_v22, %v322_v21 }
 0x385   :  { %v325_v24 = vrot.slane %v324_v23, 1 }
 0x387   :  { %v326_v27 = vadd.f32 %v325_v24, %v324_v23 }
 0x389   :  { %v332_v28 = vadd.f32 %v330_v25, %v326_v27 }
 0x38b   :  { %v336_v30 = vrot.slane %v332_v28, %v335_v26 }
 0x38d   :  { %v337_v31 = vmul.f32 %v368_v29, %v336_v30 }
 0x38f   :  { %v338_v32 = vadd.f32 %v337_v31, %v309_v14 }
 0x391   :  { %340 = vst.msk [vmem:[#allocation5] sm:$0xff] %vm339_vm6, %v338_v32 }
 0x392   :  { %490 = shalt.err (!%p487_p12)
}
 0x393   :  { %s491_s23 = scalar_lea.hbm %s622_s5, 128 }
 0x394   :  { %p492_p13 = scmp.ne.s32.totalorder %s622_s5, %s491_s23  ;;  %p495_p0 = scmp.lt.u32.totalorder %s491_s23, %s622_s5 }
 0x396   :  { %p497_p1 = pnand %p495_p0, %p492_p13 }
 0x398   :  { %500 = shalt.err (!%p497_p1)
}
 0x399   :  { %350 = dma.vmem_to_hbm [thread:$0]  %s348_s19, 128, %s622_s5, [#allocation4]  }
 0x39a   :  { %503 = dma.done.wait [#allocation4], 128  }
 0x39b   :  { %504 = vsyncadd [#allocation4], 4294967168 }
 0x39c   :  { %354 = vsyncpa [#allocation3], 1 }
 0x39d   :  { %355 = vsyncpa [#allocation4], 1 }

</bundles_post_ra>
